<compile_context>
chip_gen: v7x
topology: tpu7x:2x2x1
jax: 0.10.0
libtpu: 0.0.40
codegen_flags: <defaults>
</compile_context>

<pallas_src>
import jax
import jax.numpy as jnp
from jax.experimental import pallas as pl
from jax.experimental.pallas import tpu as pltpu


def _net_kernel(x_ref, w1_ref, b1_ref, w2_ref, b2_ref, o_ref):
    # Transposed, lane-dense layout: batch on the lane (last) axis.
    x = x_ref[...]                      # (10, TILE_B)  f32
    w1 = w1_ref[...]                    # (20, 10)      fc1.weight
    b1 = b1_ref[...]                    # (20, 1)       fc1.bias
    w2 = w2_ref[...]                    # (20, 1)       fc2.weight.T
    b2 = b2_ref[...]                    # (1, 1)        fc2.bias

    # fc1 on the VPU: 10 broadcast FMAs -> (20, TILE_B).  The K=10 / M=20
    # contraction is far too small to be worth an MXU pass.
    h = b1 + w1[:, 0:1] * x[0:1, :]
    for k in range(1, 10):              # static unroll, 9 more FMAs
        h = h + w1[:, k:k + 1] * x[k:k + 1, :]
    h = jnp.maximum(h, 0.0)             # ReLU

    # fc2 (output width 1) as a VPU multiply + sublane reduce instead of a
    # [TILE,20]x[20,1] matmul that would waste 127/128 MXU output columns.
    y = jnp.sum(h * w2, axis=0, keepdims=True) + b2    # (1, TILE_B)
    o_ref[...] = y


def net_forward(x, w1, b1, w2, b2, *, tile_b=512):
    """x: [B, 10] f32, PyTorch-shaped params -> returns [B] f32 (== .view(-1)).

    tile_b: batch tile (multiple of 128).  Per-tile VMEM footprint is tiny
    (~10*tile_b*4 B double-buffered), so 512-2048 is fine on v5e/v6e; keep it
    modest on v7x's 64 MiB VMEM.  No vmem_limit_bytes override needed here.
    """
    B = x.shape[0]
    n_tiles = pl.cdiv(B, tile_b)
    bp = n_tiles * tile_b

    # Lane-dense layout + zero-pad the batch so every block satisfies the
    # (8,128) rule (padded rows are computed then discarded).
    x_t = jnp.zeros((10, bp), x.dtype).at[:, :B].set(x.T)
    b1_c = b1.reshape(20, 1)
    w2_c = w2.reshape(1, 20).T          # (20, 1)
    b2_c = b2.reshape(1, 1)

    flops = 2 * (10 * 20 + 20) * bp                       # ~440 flops / row
    bytes_accessed = (10 + 1) * 4 * bp + (200 + 20 + 20 + 1) * 4

    out = pl.pallas_call(
        _net_kernel,
        out_shape=jax.ShapeDtypeStruct((1, bp), jnp.float32),
        grid_spec=pltpu.PrefetchScalarGridSpec(
            num_scalar_prefetch=0,
            grid=(n_tiles,),
            in_specs=[
                # x streams per batch tile; weights/biases stay VMEM-resident.
                pl.BlockSpec((10, tile_b), lambda i: (0, i)),
                pl.BlockSpec((20, 10), lambda i: (0, 0)),
                pl.BlockSpec((20, 1), lambda i: (0, 0)),
                pl.BlockSpec((20, 1), lambda i: (0, 0)),
                pl.BlockSpec((1, 1), lambda i: (0, 0)),
            ],
            out_specs=pl.BlockSpec((1, tile_b), lambda i: (0, i)),
        ),
        compiler_params=pltpu.CompilerParams(
            dimension_semantics=("parallel",)),
        cost_estimate=pl.CostEstimate(
            flops=flops, transcendentals=0, bytes_accessed=bytes_accessed),
    )(x_t, w1, b1_c, w2_c, b2_c)

    return out[0, :B]                   # drop batch padding; matches .view(-1)


def init_params(key):
    """Deterministic init matching torch.nn.Linear default (PyTorch shapes)."""
    k1, k2, k3, k4 = jax.random.split(key, 4)
    lim1 = 1.0 / jnp.sqrt(10.0)
    lim2 = 1.0 / jnp.sqrt(20.0)
    w1 = jax.random.uniform(k1, (20, 10), jnp.float32, -lim1, lim1)  # fc1.weight
    b1 = jax.random.uniform(k2, (20,), jnp.float32, -lim1, lim1)     # fc1.bias
    w2 = jax.random.uniform(k3, (1, 20), jnp.float32, -lim2, lim2)   # fc2.weight
    b2 = jax.random.uniform(k4, (1,), jnp.float32, -lim2, lim2)      # fc2.bias
    return w1, b1, w2, b2


if __name__ == "__main__":
    key = jax.random.PRNGKey(0)
    k_x, k_p = jax.random.split(key)

    # Small batch, not a multiple of the tile, to exercise tiling + padding.
    B = 300
    x = jax.random.normal(k_x, (B, 10), jnp.float32)
    w1, b1, w2, b2 = init_params(k_p)

    y = net_forward(x, w1, b1, w2, b2, tile_b=128)
    jax.block_until_ready(y)

    # Reference check in plain JAX (same math as the PyTorch forward).
    h_ref = jnp.maximum(x @ w1.T + b1, 0.0)
    y_ref = (h_ref @ w2.T + b2).reshape(-1)
    assert y.shape == (B,)
    assert jnp.allclose(y, y_ref, atol=1e-5, rtol=1e-5)

    print("KERNEL_OK")
</pallas_src>

<mosaic_0001>
module attributes {stable_mosaic.version = 11 : i64} {
  func.func @_net_kernel(%arg0: i32, %arg1: memref<10x128xf32, #tpu.memory_space<vmem>>, %arg2: memref<20x10xf32, #tpu.memory_space<vmem>>, %arg3: memref<20x1xf32, #tpu.memory_space<vmem>>, %arg4: memref<20x1xf32, #tpu.memory_space<vmem>>, %arg5: memref<1x1xf32, #tpu.memory_space<vmem>>, %arg6: memref<1x128xf32, #tpu.memory_space<vmem>>) attributes {dimension_semantics = [#tpu.dimension_semantics<parallel>], iteration_bounds = array<i64: 3>, scalar_prefetch = 0 : i64, scratch_operands = 0 : i64, tpu.core_type = #tpu.core_type<tc>, window_params = [{transform_indices = @transform_0, window_bounds = array<i64: 10, 128>}, {pipeline_mode = #tpu.pipeline_mode<synchronous>, transform_indices = @transform_1, window_bounds = array<i64: 20, 10>}, {pipeline_mode = #tpu.pipeline_mode<synchronous>, transform_indices = @transform_2, window_bounds = array<i64: 20, 1>}, {pipeline_mode = #tpu.pipeline_mode<synchronous>, transform_indices = @transform_3, window_bounds = array<i64: 20, 1>}, {pipeline_mode = #tpu.pipeline_mode<synchronous>, transform_indices = @transform_4, window_bounds = array<i64: 1, 1>}, {transform_indices = @transform_5, window_bounds = array<i64: 1, 128>}]} {
    %c0 = arith.constant 0 : index
    %c0_0 = arith.constant 0 : index
    %0 = vector.load %arg1[%c0, %c0_0] : memref<10x128xf32, #tpu.memory_space<vmem>>, vector<10x128xf32>
    %c0_1 = arith.constant 0 : index
    %c0_2 = arith.constant 0 : index
    %1 = vector.load %arg2[%c0_1, %c0_2] : memref<20x10xf32, #tpu.memory_space<vmem>>, vector<20x10xf32>
    %c0_3 = arith.constant 0 : index
    %c0_4 = arith.constant 0 : index
    %2 = vector.load %arg3[%c0_3, %c0_4] : memref<20x1xf32, #tpu.memory_space<vmem>>, vector<20x1xf32>
    %c0_5 = arith.constant 0 : index
    %c0_6 = arith.constant 0 : index
    %3 = vector.load %arg4[%c0_5, %c0_6] : memref<20x1xf32, #tpu.memory_space<vmem>>, vector<20x1xf32>
    %c0_7 = arith.constant 0 : index
    %c0_8 = arith.constant 0 : index
    %4 = vector.load %arg5[%c0_7, %c0_8] : memref<1x1xf32, #tpu.memory_space<vmem>>, vector<1x1xf32>
    %5 = vector.extract_strided_slice %1 {offsets = [0, 0], sizes = [20, 1], strides = [1, 1]} : vector<20x10xf32> to vector<20x1xf32>
    %6 = vector.extract_strided_slice %0 {offsets = [0, 0], sizes = [1, 128], strides = [1, 1]} : vector<10x128xf32> to vector<1x128xf32>
    %7 = vector.broadcast %5 : vector<20x1xf32> to vector<20x128xf32>
    %8 = vector.broadcast %6 : vector<1x128xf32> to vector<20x128xf32>
    %9 = arith.mulf %7, %8 : vector<20x128xf32>
    %10 = vector.broadcast %2 : vector<20x1xf32> to vector<20x128xf32>
    %11 = arith.addf %10, %9 : vector<20x128xf32>
    %12 = vector.extract_strided_slice %1 {offsets = [0, 1], sizes = [20, 1], strides = [1, 1]} : vector<20x10xf32> to vector<20x1xf32>
    %13 = vector.extract_strided_slice %0 {offsets = [1, 0], sizes = [1, 128], strides = [1, 1]} : vector<10x128xf32> to vector<1x128xf32>
    %14 = vector.broadcast %12 : vector<20x1xf32> to vector<20x128xf32>
    %15 = vector.broadcast %13 : vector<1x128xf32> to vector<20x128xf32>
    %16 = arith.mulf %14, %15 : vector<20x128xf32>
    %17 = arith.addf %11, %16 : vector<20x128xf32>
    %18 = vector.extract_strided_slice %1 {offsets = [0, 2], sizes = [20, 1], strides = [1, 1]} : vector<20x10xf32> to vector<20x1xf32>
    %19 = vector.extract_strided_slice %0 {offsets = [2, 0], sizes = [1, 128], strides = [1, 1]} : vector<10x128xf32> to vector<1x128xf32>
    %20 = vector.broadcast %18 : vector<20x1xf32> to vector<20x128xf32>
    %21 = vector.broadcast %19 : vector<1x128xf32> to vector<20x128xf32>
    %22 = arith.mulf %20, %21 : vector<20x128xf32>
    %23 = arith.addf %17, %22 : vector<20x128xf32>
    %24 = vector.extract_strided_slice %1 {offsets = [0, 3], sizes = [20, 1], strides = [1, 1]} : vector<20x10xf32> to vector<20x1xf32>
    %25 = vector.extract_strided_slice %0 {offsets = [3, 0], sizes = [1, 128], strides = [1, 1]} : vector<10x128xf32> to vector<1x128xf32>
    %26 = vector.broadcast %24 : vector<20x1xf32> to vector<20x128xf32>
    %27 = vector.broadcast %25 : vector<1x128xf32> to vector<20x128xf32>
    %28 = arith.mulf %26, %27 : vector<20x128xf32>
    %29 = arith.addf %23, %28 : vector<20x128xf32>
    %30 = vector.extract_strided_slice %1 {offsets = [0, 4], sizes = [20, 1], strides = [1, 1]} : vector<20x10xf32> to vector<20x1xf32>
    %31 = vector.extract_strided_slice %0 {offsets = [4, 0], sizes = [1, 128], strides = [1, 1]} : vector<10x128xf32> to vector<1x128xf32>
    %32 = vector.broadcast %30 : vector<20x1xf32> to vector<20x128xf32>
    %33 = vector.broadcast %31 : vector<1x128xf32> to vector<20x128xf32>
    %34 = arith.mulf %32, %33 : vector<20x128xf32>
    %35 = arith.addf %29, %34 : vector<20x128xf32>
    %36 = vector.extract_strided_slice %1 {offsets = [0, 5], sizes = [20, 1], strides = [1, 1]} : vector<20x10xf32> to vector<20x1xf32>
    %37 = vector.extract_strided_slice %0 {offsets = [5, 0], sizes = [1, 128], strides = [1, 1]} : vector<10x128xf32> to vector<1x128xf32>
    %38 = vector.broadcast %36 : vector<20x1xf32> to vector<20x128xf32>
    %39 = vector.broadcast %37 : vector<1x128xf32> to vector<20x128xf32>
    %40 = arith.mulf %38, %39 : vector<20x128xf32>
    %41 = arith.addf %35, %40 : vector<20x128xf32>
    %42 = vector.extract_strided_slice %1 {offsets = [0, 6], sizes = [20, 1], strides = [1, 1]} : vector<20x10xf32> to vector<20x1xf32>
    %43 = vector.extract_strided_slice %0 {offsets = [6, 0], sizes = [1, 128], strides = [1, 1]} : vector<10x128xf32> to vector<1x128xf32>
    %44 = vector.broadcast %42 : vector<20x1xf32> to vector<20x128xf32>
    %45 = vector.broadcast %43 : vector<1x128xf32> to vector<20x128xf32>
    %46 = arith.mulf %44, %45 : vector<20x128xf32>
    %47 = arith.addf %41, %46 : vector<20x128xf32>
    %48 = vector.extract_strided_slice %1 {offsets = [0, 7], sizes = [20, 1], strides = [1, 1]} : vector<20x10xf32> to vector<20x1xf32>
    %49 = vector.extract_strided_slice %0 {offsets = [7, 0], sizes = [1, 128], strides = [1, 1]} : vector<10x128xf32> to vector<1x128xf32>
    %50 = vector.broadcast %48 : vector<20x1xf32> to vector<20x128xf32>
    %51 = vector.broadcast %49 : vector<1x128xf32> to vector<20x128xf32>
    %52 = arith.mulf %50, %51 : vector<20x128xf32>
    %53 = arith.addf %47, %52 : vector<20x128xf32>
    %54 = vector.extract_strided_slice %1 {offsets = [0, 8], sizes = [20, 1], strides = [1, 1]} : vector<20x10xf32> to vector<20x1xf32>
    %55 = vector.extract_strided_slice %0 {offsets = [8, 0], sizes = [1, 128], strides = [1, 1]} : vector<10x128xf32> to vector<1x128xf32>
    %56 = vector.broadcast %54 : vector<20x1xf32> to vector<20x128xf32>
    %57 = vector.broadcast %55 : vector<1x128xf32> to vector<20x128xf32>
    %58 = arith.mulf %56, %57 : vector<20x128xf32>
    %59 = arith.addf %53, %58 : vector<20x128xf32>
    %60 = vector.extract_strided_slice %1 {offsets = [0, 9], sizes = [20, 1], strides = [1, 1]} : vector<20x10xf32> to vector<20x1xf32>
    %61 = vector.extract_strided_slice %0 {offsets = [9, 0], sizes = [1, 128], strides = [1, 1]} : vector<10x128xf32> to vector<1x128xf32>
    %62 = vector.broadcast %60 : vector<20x1xf32> to vector<20x128xf32>
    %63 = vector.broadcast %61 : vector<1x128xf32> to vector<20x128xf32>
    %64 = arith.mulf %62, %63 : vector<20x128xf32>
    %65 = arith.addf %59, %64 : vector<20x128xf32>
    %cst = arith.constant 0.000000e+00 : f32
    %66 = vector.broadcast %cst : f32 to vector<20x128xf32>
    %67 = arith.maximumf %65, %66 : vector<20x128xf32>
    %68 = vector.broadcast %3 : vector<20x1xf32> to vector<20x128xf32>
    %69 = arith.mulf %67, %68 : vector<20x128xf32>
    %cst_9 = arith.constant dense<0.000000e+00> : vector<128xf32>
    %70 = vector.multi_reduction <add>, %69, %cst_9 [0] : vector<20x128xf32> to vector<128xf32>
    %71 = vector.shape_cast %70 : vector<128xf32> to vector<1x128xf32>
    %72 = vector.broadcast %4 : vector<1x1xf32> to vector<1x128xf32>
    %73 = arith.addf %71, %72 : vector<1x128xf32>
    %c0_10 = arith.constant 0 : index
    %c0_11 = arith.constant 0 : index
    %74 = vector.load %arg6[%c0_10, %c0_11] : memref<1x128xf32, #tpu.memory_space<vmem>>, vector<1x128xf32>
    tpu.vector_store %arg6[%c0_10, %c0_11], %73 {strides = array<i32>} : memref<1x128xf32, #tpu.memory_space<vmem>>, vector<1x128xf32>,
    return
  }
  func.func @transform_0(%arg0: i32) -> (i32, i32) {
    %c0_i32 = arith.constant 0 : i32
    %c0_i32_0 = arith.constant 0 : i32
    return %c0_i32, %arg0 : i32, i32
  }
  func.func @transform_1(%arg0: i32) -> (i32, i32) {
    %c0_i32 = arith.constant 0 : i32
    %c0_i32_0 = arith.constant 0 : i32
    %c0_i32_1 = arith.constant 0 : i32
    return %c0_i32, %c0_i32_0 : i32, i32
  }
  func.func @transform_2(%arg0: i32) -> (i32, i32) {
    %c0_i32 = arith.constant 0 : i32
    %c0_i32_0 = arith.constant 0 : i32
    %c0_i32_1 = arith.constant 0 : i32
    return %c0_i32, %c0_i32_0 : i32, i32
  }
  func.func @transform_3(%arg0: i32) -> (i32, i32) {
    %c0_i32 = arith.constant 0 : i32
    %c0_i32_0 = arith.constant 0 : i32
    %c0_i32_1 = arith.constant 0 : i32
    return %c0_i32, %c0_i32_0 : i32, i32
  }
  func.func @transform_4(%arg0: i32) -> (i32, i32) {
    %c0_i32 = arith.constant 0 : i32
    %c0_i32_0 = arith.constant 0 : i32
    %c0_i32_1 = arith.constant 0 : i32
    return %c0_i32, %c0_i32_0 : i32, i32
  }
  func.func @transform_5(%arg0: i32) -> (i32, i32) {
    %c0_i32 = arith.constant 0 : i32
    %c0_i32_0 = arith.constant 0 : i32
    return %c0_i32, %arg0 : i32, i32
  }
}

</mosaic_0001>

<bundles_post_ra>
// kernel: tpu_custom_call.1
= control target key start
LH: loop header
LB: loop body
LE: loop exit
PB: predicated region body
PF: predicated region fallthrough
CT: control target
= control target key end

     0   :  { %s1007_s0 = inlined_call_operand.vmem [shape: f32[10,384], index: 0, kind: input, shape index: {}]   ;;  %s1008_s1 = inlined_call_operand.vmem [shape: f32[20,10], index: 1, kind: input, shape index: {}]   ;;  %s1009_s2 = inlined_call_operand.vmem [shape: f32[20,1], index: 2, kind: input, shape index: {}]   ;;  %s1010_s3 = inlined_call_operand.vmem [shape: f32[20,1], index: 3, kind: input, shape index: {}]   ;;  %s1011_s4 = inlined_call_operand.<no memory space> [shape: f32[1,1], index: 4, kind: input, shape index: {}]   ;;  %s1012_s5 = inlined_call_operand.hbm [shape: f32[1,384], index: 5, kind: output, shape index: {}]  }
   0x1   :  { %v10_v0 = vstv %s1011_s4 }
   0x2   :  { %11 = vst [vmem:[#allocation2] sm:$0x1] %v10_v0 }
   0x3   :  { %12 = vsyncpa [#allocation5], 0 }
   0x4   :  { %14 = vsyncpa [#allocation5 + $0x1], 0  ;;  %s817_s20 = smov 0   ;;  %s819_s21 = smov 0  }
   0x5   :  { %s821_s22 = smov 0   ;;  %s823_s23 = smov 0  }
   0x6 LB: > { %s627_s4 = sadd.s32 4294967295, %s771_s23   ;;  %s628_s24 = sadd.s32 4294967294, %s771_s23   ;;  %s771_s23 = sphi %s823_s23, %s1018_s23   ;;  %s767_s22 = sphi %s821_s22, %s1017_s22   ;;  %s763_s21 = sphi %s819_s21, %s1016_s21   ;;  %s759_s20 = sphi %s817_s20, %s1015_s20  }
   0x7   : > { %s840_s25 = sadd.s32 1, %s771_s23   ;;  %s27_s26 = sadd.s32 1, %s767_s22 }
   0x8   : > { %s24_s27 = ssub.s32 %s771_s23, %s840_s25  ;;  %p34_p0 = scmp.ne.s32.totalorder %s767_s22, %s763_s21 }
   0x9   : > { %p25_p1 = scmp.eq.s32.totalorder %s24_s27, 0  ;;  %p35_p2 = scmp.eq.s32.totalorder %s771_s23, 0 }
   0xa   : > { %p148_p3 = scmp.eq.s32.totalorder %s627_s4, 2  ;;  %p153_p4 = scmp.ne.s32.totalorder %s763_s21, %s759_s20 }
   0xb   : > { %s853_s28 = scalar_select %p25_p1, %s767_s22, %s27_s26  }
   0xc   : > { %p36_p5 = por %p35_p2, %p34_p0  ;;  %p855_p6 = por %p148_p3, %p34_p0 }
   0xd   : > { %p154_p7 = scmp.eq.s32.totalorder %s628_s24, 2  ;;  %p630_p9 = scmp.ge.s32.totalorder %s771_s23, 3 }
   0xf   : > { %p859_p8 = por %p154_p7, %p153_p4  ;;  %182 = sbr.rel (%p630_p9) target bundleno = 29 (0x1d), region = 32 }
  0x16   : > { %185 = sbr.rel (!%p36_p5) target bundleno = 29 (0x1d), region = 36  ;;  %s187_s6 = sand.u32 (%p36_p5), 1, %s767_s22  }
  0x17   : > { %s632_s7 = sshll.u32 (%p36_p5), %s771_s23, 3  ;;  %s631_s8 = sshll.u32 (%p36_p5), %s187_s6, 4 }
  0x18   : > { %s191_s11 = scalar_lea.vmem (%p36_p5), %s1007_s0, %s632_s7  ;;  %s189_s12 = scalar_lea.vmem (%p36_p5), [#allocation3], %s631_s8 }
  0x19   : > { %v221_v1 = vld [vmem:[%s191_s11] sm:$0xff] (%p36_p5)  ;;  %v223_v2 = vld [vmem:[%s191_s11 + $0x18] sm:$0xff] (%p36_p5) }
  0x1a   : > { %222 = vst [vmem:[%s189_s12] sm:$0xff] (%p36_p5), %v221_v1  ;;  %224 = vst [vmem:[%s189_s12 + $0x8] sm:$0xff] (%p36_p5), %v223_v2 }
  0x1d PF: > { %p633_p10 = scmp.ge.s32.totalorder %s771_s23, 1  ;;  %p229_p11 = scmp.lt.s32.totalorder %s771_s23, 4 }
  0x1f   : > { %p230_p12 = pnand %p633_p10, %p229_p11 }
  0x20   : > { %v874_v3 = vld [vmem:[%s1008_s1 + $0x10] sm:$0xf] (!%p230_p12)  ;;  %v264_v4 = vld [vmem:[%s1008_s1] sm:$0xff] (!%p230_p12)  ;;  %v773_v5 = vmov (!%p230_p12), 0   ;;  %v888_v7 = vld [vmem:[%s1008_s1 + $0x8] sm:$0xff] (!%p230_p12)  ;;  %v774_v10 = vmov (!%p230_p12), 1   ;;  %v289_v41 = vlaneseq (!%p230_p12) }
  0x21   : > { %233 = sbr.rel (%p230_p12) target bundleno = 293 (0x125), region = 74  ;;  %688 = vset.pattern.permute.xlu1 (!%p230_p12), %v773_v5  ;;  %687 = vset.pattern.permute.xlu0 (!%p230_p12), %v773_v5  ;;  %v267_v6 = vld [vmem:[%s1009_s2] sm:$0xff] (!%p230_p12)  ;;  %v269_v8 = vld [vmem:[%s1009_s2 + $0x10] sm:$0xf] (!%p230_p12)  ;;  %v268_v9 = vld [vmem:[%s1009_s2 + $0x8] sm:$0xff] (!%p230_p12)  ;;  %v775_v11 = vmov (!%p230_p12), 2  }
  0x22   : > { %286 = vperm.xlu1 (!%p230_p12), %688, %v874_v3   ;;  %276 = vperm.xlu0 (!%p230_p12), %687, %v264_v4   ;;  %v776_v12 = vmov (!%p230_p12), 3   ;;  %v777_v13 = vmov (!%p230_p12), 4   ;;  %v778_v14 = vmov (!%p230_p12), 5   ;;  %v779_v15 = vmov (!%p230_p12), 6   ;;  %v270_v19 = vld [vmem:[%s1010_s3] sm:$0xff] (!%p230_p12)  ;;  %v271_v21 = vld [vmem:[%s1010_s3 + $0x8] sm:$0xff] (!%p230_p12) }
  0x23   : > { %v780_v16 = vmov (!%p230_p12), 7   ;;  %v781_v17 = vmov (!%p230_p12), 8   ;;  %v782_v18 = vmov (!%p230_p12), 9   ;;  %v273_v20 = vld [vmem:[#allocation2] sm:$0x1] (!%p230_p12)  ;;  %s929_s14 = sand.u32 (!%p230_p12), 1, %s763_s21  }
  0x24   : > { %v272_v22 = vld [vmem:[%s1010_s3 + $0x10] sm:$0xf] (!%p230_p12)  ;;  %s634_s15 = sshll.u32 (!%p230_p12), %s929_s14, 4  ;;  %v934_v44 = vshrl.u32 (!%p230_p12), %v289_v41, 7  ;;  %vm534_vm0 = vcmask (!%p230_p12), 1043456   ;;  %s635_s17 = sshll.u32 (!%p230_p12), %s627_s4, 4 }
  0x25   : > { %s939_s16 = scalar_lea.vmem (!%p230_p12), [#allocation3], %s634_s15  ;;  %s261_s18 = scalar_lea.vmem (!%p230_p12), [#allocation4], %s929_s14 }
  0x26   : > { %298 = vperm.xlu1 (!%p230_p12), %688, %v267_v6   ;;  %281 = vperm.xlu0 (!%p230_p12), %687, %v888_v7   ;;  %v937_v47 = vsub.s32 (!%p230_p12), 0, %v934_v44  ;;  %v262_v48 = vld [vmem:[%s939_s16] sm:$0xff] (!%p230_p12)  ;;  %v328_v49 = vsub.s32 (!%p230_p12), 1, %v934_v44  ;;  %v350_v52 = vsub.s32 (!%p230_p12), 2, %v934_v44  ;;  %v372_v56 = vsub.s32 (!%p230_p12), 3, %v934_v44  ;;  %s567_s19 = sshll.u32 (!%p230_p12), %s261_s18, 4  ;;  %s964_s27 = scalar_lea.hbm (!%p230_p12), %s1012_s5, %s635_s17  ;;  %s966_s19 = int_to_ptr.vmem [resolvable:$true] %s567_s19 }
  0x27   : > { %v394_v60 = vsub.s32 (!%p230_p12), 4, %v934_v44  ;;  %v416_v61 = vsub.s32 (!%p230_p12), 5, %v934_v44  ;;  %v438_v2 = vsub.s32 (!%p230_p12), 6, %v934_v44  ;;  %s555_s6 = scalar_lea.sflag (!%p230_p12), [#allocation5], %s929_s14  ;;  %s709_s7 = scalar_lea.vmem (!%p230_p12), %s966_s19, 16 }
  0x28   : > { %v292_v51 = vrot.slane %v262_v48, %v937_v47  ;;  %v329_v55 = vrot.slane %v262_v48, %v328_v49  ;;  %v351_v59 = vrot.slane %v262_v48, %v350_v52  ;;  %v373_v1 = vrot.slane %v262_v48, %v372_v56  ;;  %p710_p13 = scmp.ne.s32.totalorder %s966_s19, %s709_s7  ;;  %s783_s4 = smov [#allocation4]  }
  0x29   : > { %s713_s8 = sshll.u32 %s783_s4, 4  ;;  %s714_s8 = int_to_ptr.vmem [resolvable:$false] %s713_s8 }
  0x2a   : > { %308 = vperm.xlu1 %688, %v269_v8   ;;  %303 = vperm.xlu0 %687, %v268_v9   ;;  %v395_v8 = vrot.slane %v262_v48, %v394_v60  ;;  %p711_p0 = pnand %p710_p13, %p855_p6  ;;  %s715_s9 = scalar_lea.vmem %s714_s8, 32 }
  0x2b   : > { %p716_p2 = scmp.lt.s32.totalorder %s966_s19, %s714_s8  ;;  %p717_p3 = scmp.lt.s32.totalorder %s715_s9, %s709_s7 }
  0x2c   : > { %p712_p1 = pneg %p711_p0 }
  0x2d   : > { %p718_p4 = por %p717_p3, %p716_p2 }
  0x2e   : > { %690 = vset.pattern.permute.xlu1 %v774_v10  ;;  %689 = vset.pattern.permute.xlu0 %v774_v10 }
  0x2f   : > { %319 = vperm.xlu1 %690, %v888_v7   ;;  %315 = vperm.xlu0 %689, %v264_v4   ;;  %p719_p5 = pnand %p718_p4, %p712_p1 }
  0x33   : > { %323 = vperm.xlu1 %690, %v874_v3   ;;  %691 = vset.pattern.permute.xlu0 %v775_v11 }
  0x34   : > { %337 = vperm.xlu0 %691, %v264_v4  }
  0x37   : > { %692 = vset.pattern.permute.xlu1 %v775_v11  ;;  %v417_v11 = vrot.slane %v262_v48, %v416_v61 }
  0x38   : > { %341 = vperm.xlu1 %692, %v888_v7   ;;  %693 = vset.pattern.permute.xlu0 %v776_v12 }
  0x39   : > { %359 = vperm.xlu0 %693, %v264_v4  }
  0x3c   : > { %345 = vperm.xlu1 %692, %v874_v3  }
  0x3d   : > { %695 = vset.pattern.permute.xlu0 %v777_v13 }
  0x3e   : > { %381 = vperm.xlu0 %695, %v264_v4  }
  0x40   : > { %694 = vset.pattern.permute.xlu1 %v776_v12  ;;  %v460_v12 = vsub.s32 7, %v934_v44 }
  0x41   : > { %363 = vperm.xlu1 %694, %v888_v7  }
  0x42   : > { %697 = vset.pattern.permute.xlu0 %v778_v14 }
  0x43   : > { %403 = vperm.xlu0 %697, %v264_v4  }
  0x45   : > { %367 = vperm.xlu1 %694, %v874_v3  }
  0x47   : > { %699 = vset.pattern.permute.xlu0 %v779_v15 }
  0x48   : > { %425 = vperm.xlu0 %699, %v264_v4  }
  0x49   : > { %696 = vset.pattern.permute.xlu1 %v777_v13 }
  0x4a   : > { %385 = vperm.xlu1 %696, %v888_v7  }
  0x4c   : > { %701 = vset.pattern.permute.xlu0 %v780_v16 }
  0x4d   : > { %447 = vperm.xlu0 %701, %v264_v4  }
  0x4e   : > { %389 = vperm.xlu1 %696, %v874_v3  }
  0x51   : > { %703 = vset.pattern.permute.xlu0 %v781_v17 }
  0x52   : > { %698 = vset.pattern.permute.xlu1 %v778_v14  ;;  %469 = vperm.xlu0 %703, %v264_v4  }
  0x53   : > { %407 = vperm.xlu1 %698, %v888_v7  }
  0x56   : > { %705 = vset.pattern.permute.xlu0 %v782_v18 }
  0x57   : > { %411 = vperm.xlu1 %698, %v874_v3   ;;  %491 = vperm.xlu0 %705, %v264_v4  }
  0x5b   : > { %700 = vset.pattern.permute.xlu1 %v779_v15  ;;  %707 = vset.pattern.permute.xlu0 %v773_v5 }
  0x5c   : > { %429 = vperm.xlu1 %700, %v888_v7   ;;  %517 = vperm.xlu0 %707, %v270_v19   ;;  %v439_v19 = vrot.slane %v262_v48, %v438_v2 }
  0x60   : > { %433 = vperm.xlu1 %700, %v874_v3   ;;  %545 = vperm.xlu0 %707, %v273_v20  }
  0x64   : > { %702 = vset.pattern.permute.xlu1 %v780_v16 }
  0x65   : > { %451 = vperm.xlu1 %702, %v888_v7  }
  0x69   : > { %455 = vperm.xlu1 %702, %v874_v3  }
  0x6d   : > { %704 = vset.pattern.permute.xlu1 %v781_v17 }
  0x6e   : > { %473 = vperm.xlu1 %704, %v888_v7  }
  0x72   : > { %477 = vperm.xlu1 %704, %v874_v3  }
  0x76   : > { %706 = vset.pattern.permute.xlu1 %v782_v18 }
  0x77   : > { %495 = vperm.xlu1 %706, %v888_v7  }
  0x7b   : > { %499 = vperm.xlu1 %706, %v874_v3  }
  0x7f   : > { %708 = vset.pattern.permute.xlu1 %v773_v5 }
  0x80   : > { %522 = vperm.xlu1 %708, %v271_v21  }
  0x84   : > { %527 = vperm.xlu1 %708, %v272_v22  }
  0xa1   : > { %v287_v23 = vpop.permute.xlu1 %286  ;;  %v277_v27 = vpop.permute.xlu0 %276 }
  0xa2   : > { %v293_v58 = vmul.f32 %v292_v51, %v277_v27  ;;  %v295_v9 = vmul.f32 %v292_v51, %v287_v23  ;;  %v461_v23 = vrot.slane %v262_v48, %v460_v12 }
  0xa5   : > { %v299_v24 = vpop.permute.xlu1 %298  ;;  %v282_v30 = vpop.permute.xlu0 %281 }
  0xa6   : > { %v294_v54 = vmul.f32 %v292_v51, %v282_v30  ;;  %v311_v5 = vadd.f32 %v299_v24, %v293_v58 }
  0xa9   : > { %v309_v25 = vpop.permute.xlu1 %308  ;;  %v304_v32 = vpop.permute.xlu0 %303 }
  0xaa   : > { %v312_v62 = vadd.f32 %v304_v32, %v294_v54  ;;  %v313_v17 = vadd.f32 %v309_v25, %v295_v9 }
  0xae   : > { %v320_v26 = vpop.permute.xlu1 %319  ;;  %v316_v34 = vpop.permute.xlu0 %315 }
  0xaf   : > { %v331_v63 = vmul.f32 %v329_v55, %v320_v26  ;;  %v330_v0 = vmul.f32 %v329_v55, %v316_v34  ;;  %v263_v26 = vld [vmem:[%s939_s16 + $0x8] sm:$0x3] }
  0xb0   : > { %v483_v25 = vrot.slane %v263_v26, %v937_v47 }
  0xb1   : > { %v334_v13 = vadd.f32 %v331_v63, %v312_v62  ;;  %v333_v14 = vadd.f32 %v330_v0, %v311_v5 }
  0xb2   : > { %v324_v28 = vpop.permute.xlu1 %323 }
  0xb3   : > { %v338_v37 = vpop.permute.xlu0 %337  ;;  %v332_v10 = vmul.f32 %v329_v55, %v324_v28 }
  0xb4   : > { %v352_v6 = vmul.f32 %v351_v59, %v338_v37 }
  0xb6   : > { %v355_v20 = vadd.f32 %v352_v6, %v333_v14 }
  0xb7   : > { %v342_v29 = vpop.permute.xlu1 %341 }
  0xb8   : > { %v360_v39 = vpop.permute.xlu0 %359  ;;  %v353_v7 = vmul.f32 %v351_v59, %v342_v29  ;;  %v335_v29 = vadd.f32 %v332_v10, %v313_v17 }
  0xb9   : > { %v374_v15 = vmul.f32 %v373_v1, %v360_v39 }
  0xba   : > { %v356_v21 = vadd.f32 %v353_v7, %v334_v13 }
  0xbb   : > { %v346_v31 = vpop.permute.xlu1 %345  ;;  %v377_v32 = vadd.f32 %v374_v15, %v355_v20 }
  0xbc   : > { %v354_v18 = vmul.f32 %v351_v59, %v346_v31 }
  0xbd   : > { %v382_v42 = vpop.permute.xlu0 %381 }
  0xbe   : > { %v396_v22 = vmul.f32 %v395_v8, %v382_v42  ;;  %v357_v44 = vadd.f32 %v354_v18, %v335_v29 }
  0xc0   : > { %v364_v33 = vpop.permute.xlu1 %363  ;;  %v399_v31 = vadd.f32 %v396_v22, %v377_v32 }
  0xc1   : > { %v375_v16 = vmul.f32 %v373_v1, %v364_v33 }
  0xc2   : > { %v404_v46 = vpop.permute.xlu0 %403 }
  0xc3   : > { %v378_v34 = vadd.f32 %v375_v16, %v356_v21  ;;  %v418_v37 = vmul.f32 %v417_v11, %v404_v46 }
  0xc4   : > { %v368_v35 = vpop.permute.xlu1 %367 }
  0xc5   : > { %v376_v30 = vmul.f32 %v373_v1, %v368_v35  ;;  %v505_v35 = vrot.slane %v263_v26, %v328_v49  ;;  %v421_v48 = vadd.f32 %v418_v37, %v399_v31 }
  0xc7   : > { %v426_v53 = vpop.permute.xlu0 %425  ;;  %v379_v52 = vadd.f32 %v376_v30, %v357_v44 }
  0xc8   : > { %v440_v39 = vmul.f32 %v439_v19, %v426_v53 }
  0xc9   : > { %v386_v36 = vpop.permute.xlu1 %385 }
  0xca   : > { %v397_v24 = vmul.f32 %v395_v8, %v386_v36 }
  0xcc   : > { %v448_v3 = vpop.permute.xlu0 %447  ;;  %v400_v51 = vadd.f32 %v397_v24, %v378_v34 }
  0xcd   : > { %v926_v38 = vpop.permute.xlu1 %389  ;;  %v462_v55 = vmul.f32 %v461_v23, %v448_v3 }
  0xce   : > { %v398_v33 = vmul.f32 %v395_v8, %v926_v38  ;;  %v443_v38 = vadd.f32 %v440_v39, %v421_v48 }
  0xd0   : > { %v401_v46 = vadd.f32 %v398_v33, %v379_v52  ;;  %v465_v0 = vadd.f32 %v462_v55, %v443_v38 }
  0xd1   : > { %v470_v28 = vpop.permute.xlu0 %469 }
  0xd2   : > { %v408_v40 = vpop.permute.xlu1 %407  ;;  %v484_v60 = vmul.f32 %v483_v25, %v470_v28 }
  0xd3   : > { %v419_v41 = vmul.f32 %v417_v11, %v408_v40 }
  0xd4   : > { %v487_v3 = vadd.f32 %v484_v60, %v465_v0 }
  0xd5   : > { %v422_v56 = vadd.f32 %v419_v41, %v400_v51 }
  0xd6   : > { %v931_v43 = vpop.permute.xlu1 %411  ;;  %v492_v40 = vpop.permute.xlu0 %491 }
  0xd7   : > { %v420_v54 = vmul.f32 %v417_v11, %v931_v43  ;;  %v506_v1 = vmul.f32 %v505_v35, %v492_v40 }
  0xd9   : > { %v423_v53 = vadd.f32 %v420_v54, %v401_v46  ;;  %v509_v8 = vadd.f32 %v506_v1, %v487_v3 }
  0xdb   : > { %v430_v45 = vpop.permute.xlu1 %429  ;;  %v512_v12 = vmax.f32 %v509_v8, 0.0 }
  0xdc   : > { %v441_v42 = vmul.f32 %v439_v19, %v430_v45 }
  0xde   : > { %v444_v61 = vadd.f32 %v441_v42, %v422_v56 }
  0xdf   : > { %v943_v50 = vpop.permute.xlu1 %433 }
  0xe0   : > { %v442_v59 = vmul.f32 %v439_v19, %v943_v50 }
  0xe2   : > { %v445_v49 = vadd.f32 %v442_v59, %v423_v53 }
  0xe4   : > { %v452_v57 = vpop.permute.xlu1 %451 }
  0xe5   : > { %v463_v58 = vmul.f32 %v461_v23, %v452_v57 }
  0xe7   : > { %v466_v2 = vadd.f32 %v463_v58, %v444_v61 }
  0xe8   : > { %v456_v4 = vpop.permute.xlu1 %455 }
  0xe9   : > { %v464_v63 = vmul.f32 %v461_v23, %v456_v4  ;;  %v518_v4 = vpop.permute.xlu0 %517 }
  0xea   : > { %v530_v17 = vmul.f32 %v518_v4, %v512_v12 }
  0xeb   : > { %v467_v57 = vadd.f32 %v464_v63, %v445_v49 }
  0xed   : > { %v474_v27 = vpop.permute.xlu1 %473  ;;  %v546_v30 = vpop.permute.xlu0 %545 }
  0xee   : > { %v485_v62 = vmul.f32 %v483_v25, %v474_v27  ;;  %v551_v28 = vrot.slane %v546_v30, %v937_v47 }
  0xf0   : > { %v488_v6 = vadd.f32 %v485_v62, %v466_v2 }
  0xf1   : > { %v478_v36 = vpop.permute.xlu1 %477 }
  0xf2   : > { %v486_v5 = vmul.f32 %v483_v25, %v478_v36 }
  0xf4   : > { %v489_v10 = vadd.f32 %v486_v5, %v467_v57 }
  0xf6   : > { %v496_v45 = vpop.permute.xlu1 %495 }
  0xf7   : > { %v507_v43 = vmul.f32 %v505_v35, %v496_v45 }
  0xf9   : > { %v510_v9 = vadd.f32 %v507_v43, %v488_v6 }
  0xfa   : > { %v500_v7 = vpop.permute.xlu1 %499 }
  0xfb   : > { %v508_v50 = vmul.f32 %v505_v35, %v500_v7  ;;  %v513_v14 = vmax.f32 %v510_v9, 0.0 }
  0xfd   : > { %v511_v11 = vadd.f32 %v508_v50, %v489_v10 }
  0xff   : > { %v523_v13 = vpop.permute.xlu1 %522  ;;  %v514_v16 = vmax.f32 %v511_v11, 0.0 }
 0x100   : > { %v531_v15 = vmul.f32 %v523_v13, %v513_v14 }
 0x102   : > { %v533_v20 = vadd.f32 %v531_v15, %v530_v17 }
 0x103   : > { %v528_v18 = vpop.permute.xlu1 %527 }
 0x104   : > { %v532_v19 = vmul.f32 %v528_v18, %v514_v16 }
 0x106   : > { %v535_v21 = vsel %vm534_vm0, %v532_v19, 0.0 }
 0x107   : > { %v536_v22 = vadd.f32 %v535_v21, %v533_v20 }
 0x109   : > { %v537_v24 = vrot.slane %v536_v22, 4 }
 0x10b   : > { %v538_v26 = vadd.f32 %v537_v24, %v536_v22 }
 0x10d   : > { %v539_v27 = vrot.slane %v538_v26, 2 }
 0x10f   : > { %v540_v29 = vadd.f32 %v539_v27, %v538_v26 }
 0x111   : > { %v541_v23 = vrot.slane %v540_v29, 1 }
 0x113   : > { %v542_v32 = vadd.f32 %v541_v23, %v540_v29 }
 0x115   : > { %v552_v34 = vadd.f32 %v551_v28, %v542_v32 }
 0x117   : > { %553 = vst [vmem:[%s261_s18] sm:$0x1] %v552_v34 }
 0x118   : > { %722 = shalt.err (!%p719_p5)
}
 0x119   : > { %s723_s10 = scalar_lea.hbm %s964_s27, 16  ;;  %s727_s13 = scalar_lea.hbm %s1012_s5, 48 }
 0x11a   : > { %p724_p7 = scmp.ne.s32.totalorder %s964_s27, %s723_s10  ;;  %p728_p11 = scmp.lt.u32.totalorder %s964_s27, %s1012_s5 }
 0x11b   : > { %p729_p12 = scmp.lt.u32.totalorder %s727_s13, %s723_s10  ;;  %p731_p0 = scmp.lt.u32.totalorder %s723_s10, %s964_s27 }
 0x11c   : > { %p725_p9 = pnand %p724_p7, %p855_p6 }
 0x11d   : > { %p730_p13 = por %p729_p12, %p728_p11 }
 0x11e   : > { %p726_p10 = pneg %p725_p9 }
 0x11f   : > { %p732_p1 = por %p731_p0, %p730_p13 }
 0x121   : > { %p733_p2 = pnand %p732_p1, %p726_p10 }
 0x123   : > { %736 = shalt.err (!%p733_p2)
}
 0x124   : > { %638 = dma.vmem_to_hbm [thread:$0]  (%p855_p6), %s966_s19, 16, %s964_s27, %s555_s6  }
 0x125 PF: > { %p644_p3 = scmp.ge.s32.totalorder %s771_s23, 2  ;;  %s579_s16 = sand.u32 1, %s759_s20  }
 0x126   : > { %s580_s17 = scalar_lea.sflag [#allocation5], %s579_s16 }
 0x127   : > { %p641_p4 = pnand %p644_p3, %p859_p8 }
 0x129   : > { %754 = dma.done.wait (!%p641_p4), %s580_s17, 16  }
 0x12a   : > { %756 = vsyncadd (!%p641_p4), %s580_s17, 4294967280  ;;  %p17_p5 = scmp.ge.s32.totalorder %s840_s25, 5   ;;  %s1015_s20 = smov %s763_s21 }
 0x12b   : > { %s1016_s21 = smov %s767_s22  ;;  %s1017_s22 = smov %s853_s28 }
 0x12c   : > { %s1018_s23 = smov %s840_s25  ;;  %19 = sbr.rel (!%p17_p5) target bundleno = 6 (0x6), region = 118 }
 0x133   :  { %584 = vsyncpa [#allocation5], 1 }
 0x134   :  { %586 = vsyncpa [#allocation5 + $0x1], 1 }

</bundles_post_ra>
